<compile_context>
chip_gen: v7x
topology: tpu7x:2x2x1
jax: 0.10.0
libtpu: 0.0.40
codegen_flags: <defaults>
</compile_context>

<pallas_src>
import jax
import jax.numpy as jnp
from jax.experimental import pallas as pl
from jax.experimental.pallas import tpu as pltpu


# ----------------------------- Pallas kernel --------------------------------

def _ex_ht_kernel(xf_ref, exc_ref, wbig_ref, bcast_ref, o_ref):
    # (t, L) @ (L, L_pad): per-node linear + residual via the block-diagonal kron weight.
    acc = jnp.dot(xf_ref[...], wbig_ref[...], preferred_element_type=jnp.float32)
    # (t, c_out) @ (c_out, L_pad): broadcast the per-(b,t) ex contribution (incl. bias)
    # across the N node groups with a tiny resident 0/1 weight.
    acc = acc + jnp.dot(exc_ref[...], bcast_ref[...], preferred_element_type=jnp.float32)
    o_ref[...] = acc.astype(o_ref.dtype)


# --------------------------- wrapper / glue code -----------------------------

def ht_transform(x_ex):
    """JAX port of ex_HT.ht_transform; x_ex: (B, T, 4 + n_temps) float."""
    days = x_ex[..., 0].astype(jnp.int32) - 1
    hours = x_ex[..., 1].astype(jnp.int32)
    months = x_ex[..., 2].astype(jnp.int32) - 1
    weekdays = x_ex[..., 3].astype(jnp.int32)
    temps = x_ex[..., 4:].astype(jnp.float32)                       # (B, T, n)

    hours_oh = jax.nn.one_hot(hours, 24, dtype=jnp.float32)
    days_oh = jax.nn.one_hot(days, 31, dtype=jnp.float32)
    weekdays_oh = jax.nn.one_hot(weekdays, 7, dtype=jnp.float32)
    months_oh = jax.nn.one_hot(months, 12, dtype=jnp.float32)
    t1, t2, t3 = temps, temps ** 2, temps ** 3

    def inter(t, oh):                         # (B,T,n) x (B,T,K) -> (B,T,n*K)
        p = t[..., :, None] * oh[..., None, :]
        return p.reshape(p.shape[:-2] + (p.shape[-2] * p.shape[-1],))

    return jnp.concatenate(
        [hours_oh, days_oh, weekdays_oh, months_oh, t1, t2, t3,
         inter(t1, hours_oh), inter(t2, hours_oh), inter(t3, hours_oh),
         inter(t1, months_oh), inter(t2, months_oh), inter(t3, months_oh)],
        axis=-1)


def prepare_params(W, b, N, c_out):
    """Hoisted once per model (weights are static per step): build resident kernel weights.

    W: (ex_c_out, c_out + Dex) PyTorch nn.Linear layout; b: (ex_c_out,).
    Returns (wbig, bcast, w_ex, bias) consumed by ex_ht_forward.
    """
    ex_c_out = W.shape[0]
    assert ex_c_out == c_out, "residual `+ X` requires ex_c_out == c_out"
    L = N * c_out
    L_pad = ((L + 127) // 128) * 128

    w_x = W[:, :c_out].T + jnp.eye(c_out, dtype=W.dtype)       # (c_out, c_out), residual folded
    wbig = jnp.kron(jnp.eye(N, dtype=W.dtype), w_x)            # (L, L) block-diagonal
    wbig = jnp.pad(wbig, ((0, 0), (0, L_pad - L)))             # lane-dense output columns
    bcast = jnp.tile(jnp.eye(c_out, dtype=W.dtype), (1, N))    # (c_out, L) node broadcaster
    bcast = jnp.pad(bcast, ((0, 0), (0, L_pad - L)))           # (c_out, L_pad)
    w_ex = W[:, c_out:].T                                      # (Dex, c_out), used wrapper-side
    # TODO(synk): for very large N the (L, L_pad) kron weight outgrows VMEM and the N-fold
    # block-diagonal FLOP waste can turn v5e MXU-bound; tile the node axis (second grid
    # axis with a per-node-tile weight) instead of folding all N onto the lane axis.
    return wbig, bcast, w_ex, b


def _vmem_budget_bytes():
    try:
        cap = int(pltpu.get_tpu_info().vmem_capacity_bytes)
    except Exception:
        cap = 64 << 20
    # use at most half of reported VMEM (headroom for Mosaic scratch / the other v7x TC)
    return min(cap // 2, 64 << 20)


def _choose_row_tile(bt, stream_row_bytes, data_budget_bytes):
    t = max(8, data_budget_bytes // (2 * stream_row_bytes))    # streamed tiles are 2x buffered
    t = min(t, ((bt + 7) // 8) * 8)
    t = max(8, (t // 8) * 8)
    # >= 2 steps per v7x TensorCore (>= 4 total) when there are enough rows,
    # so the BlockSpec double-buffer has something to overlap on each core.
    target_steps = 4 if bt >= 32 else max(1, bt // 8)
    while t > 8 and (bt + t - 1) // t < target_steps:
        t = max(8, ((t // 2) // 8) * 8)
    return t


@jax.jit
def ex_ht_forward(X, X_ex, wbig, bcast, w_ex, bias):
    """X: (B,T,N,c_out) f32; X_ex: (B,T,4+n_temps) f32; rest from prepare_params."""
    B, T, N, c_out = X.shape
    L = N * c_out
    L_pad = wbig.shape[1]
    Dex = w_ex.shape[0]
    BT = B * T

    xf = X.reshape(BT, L)                                      # free row-major view
    feats = ht_transform(X_ex).reshape(BT, Dex).astype(jnp.float32)
    # Per-(b,t) ex contribution (+ bias), computed once; the Dex-wide (non-128-aligned)
    # contraction stays in XLA at HIGHEST precision and never hits the kernel's HBM stream.
    exc = (jnp.dot(feats, w_ex.astype(jnp.float32),
                   precision=jax.lax.Precision.HIGHEST)
           + bias.astype(jnp.float32))                         # (BT, c_out)

    stream_row_bytes = 4 * (L + c_out + L_pad)                 # x + exc + out, per row
    resident_bytes = 4 * (L * L_pad + c_out * L_pad)           # single-buffered weights
    budget = _vmem_budget_bytes()
    data_budget = max((budget * 3) // 4 - resident_bytes, 2 << 20)
    t_bt = _choose_row_tile(BT, stream_row_bytes, data_budget)
    grid = (pl.cdiv(BT, t_bt),)                                # no wrapper-side row pad
    vmem_limit = max(32 << 20,
                     resident_bytes + 2 * t_bt * stream_row_bytes + (8 << 20))

    out = pl.pallas_call(
        _ex_ht_kernel,
        out_shape=jax.ShapeDtypeStruct((BT, L_pad), X.dtype),
        grid_spec=pltpu.PrefetchScalarGridSpec(
            num_scalar_prefetch=0,
            grid=grid,
            in_specs=[
                pl.BlockSpec((t_bt, L), lambda i: (i, 0)),         # folded X rows
                pl.BlockSpec((t_bt, c_out), lambda i: (i, 0)),     # per-(b,t) ex contribution
                pl.BlockSpec((L, L_pad), lambda i: (0, 0),
                             pipeline_mode=pl.Buffered(1)),        # kron(I_N, W_x+I), resident
                pl.BlockSpec((c_out, L_pad), lambda i: (0, 0),
                             pipeline_mode=pl.Buffered(1)),        # node broadcaster, resident
            ],
            out_specs=pl.BlockSpec((t_bt, L_pad), lambda i: (i, 0)),
        ),
        compiler_params=pltpu.CompilerParams(
            dimension_semantics=("parallel",),
            vmem_limit_bytes=int(vmem_limit)),
    )(xf, exc, wbig, bcast)

    if L_pad != L:
        out = out[:, :L]                                       # drop lane padding (fused slice)
    return out.reshape(B, T, N, c_out)


# ------------------------------ pure-JAX reference ---------------------------

def ex_ht_reference(X, X_ex, W, b):
    B, T, N, c_out = X.shape
    feats = ht_transform(X_ex)
    fe = jnp.broadcast_to(feats[:, :, None, :], (B, T, N, feats.shape[-1]))
    xc = jnp.concatenate([X, fe], axis=-1)
    y = jnp.einsum("btnf,of->btno", xc, W, precision=jax.lax.Precision.HIGHEST)
    return y + b + X


if __name__ == "__main__":
    # configs: c_out = ex_c_out = 4, one temperature feature -> ht_ex_dim = 185
    B, T, N = 2, 8, 16
    c_out, ex_c_out, n_temps = 4, 4, 1
    Dex = 74 + 111 * n_temps

    key = jax.random.PRNGKey(0)
    kx, kd, kh, km, kw, kt, kW, kb = jax.random.split(key, 8)
    X = jax.random.normal(kx, (B, T, N, c_out), dtype=jnp.float32)
    days = jax.random.randint(kd, (B, T, 1), 1, 32).astype(jnp.float32)
    hours = jax.random.randint(kh, (B, T, 1), 0, 24).astype(jnp.float32)
    months = jax.random.randint(km, (B, T, 1), 1, 13).astype(jnp.float32)
    weekdays = jax.random.randint(kw, (B, T, 1), 0, 7).astype(jnp.float32)
    temps = jax.random.normal(kt, (B, T, n_temps), dtype=jnp.float32)
    X_ex = jnp.concatenate([days, hours, months, weekdays, temps], axis=-1)

    # 1) module as specified: zero-initialized Linear (output must reduce to X).
    W0 = jnp.zeros((ex_c_out, c_out + Dex), dtype=jnp.float32)
    b0 = jnp.zeros((ex_c_out,), dtype=jnp.float32)
    p0 = prepare_params(W0, b0, N, c_out)
    out0 = jax.block_until_ready(ex_ht_forward(X, X_ex, *p0))
    assert out0.shape == (B, T, N, ex_c_out)
    assert jnp.allclose(out0, ex_ht_reference(X, X_ex, W0, b0), atol=1e-5, rtol=1e-5), \
        "mismatch vs reference (zero weights)"

    # 2) nonzero weights so the matmul / ex-broadcast path is actually exercised.
    W1 = 0.05 * jax.random.normal(kW, (ex_c_out, c_out + Dex), dtype=jnp.float32)
    b1 = 0.1 * jax.random.normal(kb, (ex_c_out,), dtype=jnp.float32)
    p1 = prepare_params(W1, b1, N, c_out)
    out1 = jax.block_until_ready(ex_ht_forward(X, X_ex, *p1))
    ref1 = ex_ht_reference(X, X_ex, W1, b1)
    assert jnp.allclose(out1, ref1, atol=1e-4, rtol=1e-4), "mismatch vs reference"

    print("KERNEL_OK")
</pallas_src>

<mosaic_0001>
module attributes {stable_mosaic.version = 11 : i64} {
  func.func @_ex_ht_kernel(%arg0: i32, %arg1: memref<8x64xf32, #tpu.memory_space<vmem>>, %arg2: memref<8x4xf32, #tpu.memory_space<vmem>>, %arg3: memref<64x128xf32, #tpu.memory_space<vmem>>, %arg4: memref<4x128xf32, #tpu.memory_space<vmem>>, %arg5: memref<8x128xf32, #tpu.memory_space<vmem>>) attributes {dimension_semantics = [#tpu.dimension_semantics<parallel>], iteration_bounds = array<i64: 2>, scalar_prefetch = 0 : i64, scratch_operands = 0 : i64, tpu.core_type = #tpu.core_type<tc>, window_params = [{transform_indices = @transform_0, window_bounds = array<i64: 8, 64>}, {transform_indices = @transform_1, window_bounds = array<i64: 8, 4>}, {pipeline_mode = #tpu.pipeline_mode<synchronous>, transform_indices = @transform_2, window_bounds = array<i64: 64, 128>}, {pipeline_mode = #tpu.pipeline_mode<synchronous>, transform_indices = @transform_3, window_bounds = array<i64: 4, 128>}, {transform_indices = @transform_4, window_bounds = array<i64: 8, 128>}]} {
    %c0 = arith.constant 0 : index
    %c0_0 = arith.constant 0 : index
    %0 = vector.load %arg1[%c0, %c0_0] : memref<8x64xf32, #tpu.memory_space<vmem>>, vector<8x64xf32>
    %c0_1 = arith.constant 0 : index
    %c0_2 = arith.constant 0 : index
    %1 = vector.load %arg3[%c0_1, %c0_2] : memref<64x128xf32, #tpu.memory_space<vmem>>, vector<64x128xf32>
    %cst = arith.constant dense<0.000000e+00> : vector<8x128xf32>
    %2 = tpu.matmul %0, %1, %cst {dimension_numbers = #tpu.dot_dimension_numbers<[1], [0], [0], [1], [0, 0, 1, 1], [], []>} : vector<8x64xf32>, vector<64x128xf32>, vector<8x128xf32> -> vector<8x128xf32>
    %c0_3 = arith.constant 0 : index
    %c0_4 = arith.constant 0 : index
    %3 = vector.load %arg2[%c0_3, %c0_4] : memref<8x4xf32, #tpu.memory_space<vmem>>, vector<8x4xf32>
    %c0_5 = arith.constant 0 : index
    %c0_6 = arith.constant 0 : index
    %4 = vector.load %arg4[%c0_5, %c0_6] : memref<4x128xf32, #tpu.memory_space<vmem>>, vector<4x128xf32>
    %cst_7 = arith.constant dense<0.000000e+00> : vector<8x128xf32>
    %5 = tpu.matmul %3, %4, %cst_7 {dimension_numbers = #tpu.dot_dimension_numbers<[1], [0], [0], [1], [0, 0, 1, 1], [], []>} : vector<8x4xf32>, vector<4x128xf32>, vector<8x128xf32> -> vector<8x128xf32>
    %6 = arith.addf %2, %5 : vector<8x128xf32>
    %c0_8 = arith.constant 0 : index
    %c0_9 = arith.constant 0 : index
    %7 = vector.load %arg5[%c0_8, %c0_9] : memref<8x128xf32, #tpu.memory_space<vmem>>, vector<8x128xf32>
    tpu.vector_store %arg5[%c0_8, %c0_9], %6 {strides = array<i32>} : memref<8x128xf32, #tpu.memory_space<vmem>>, vector<8x128xf32>,
    return
  }
  func.func @transform_0(%arg0: i32) -> (i32, i32) {
    %c0_i32 = arith.constant 0 : i32
    %c0_i32_0 = arith.constant 0 : i32
    return %arg0, %c0_i32 : i32, i32
  }
  func.func @transform_1(%arg0: i32) -> (i32, i32) {
    %c0_i32 = arith.constant 0 : i32
    %c0_i32_0 = arith.constant 0 : i32
    return %arg0, %c0_i32 : i32, i32
  }
  func.func @transform_2(%arg0: i32) -> (i32, i32) {
    %c0_i32 = arith.constant 0 : i32
    %c0_i32_0 = arith.constant 0 : i32
    %c0_i32_1 = arith.constant 0 : i32
    return %c0_i32, %c0_i32_0 : i32, i32
  }
  func.func @transform_3(%arg0: i32) -> (i32, i32) {
    %c0_i32 = arith.constant 0 : i32
    %c0_i32_0 = arith.constant 0 : i32
    %c0_i32_1 = arith.constant 0 : i32
    return %c0_i32, %c0_i32_0 : i32, i32
  }
  func.func @transform_4(%arg0: i32) -> (i32, i32) {
    %c0_i32 = arith.constant 0 : i32
    %c0_i32_0 = arith.constant 0 : i32
    return %arg0, %c0_i32 : i32, i32
  }
}

</mosaic_0001>

<bundles_post_ra>
// kernel: ex_ht_forward.1
= control target key start
LH: loop header
LB: loop body
LE: loop exit
PB: predicated region body
PF: predicated region fallthrough
CT: control target
= control target key end

     0   :  { %s547_s15 = smov 0   ;;  %s594_s0 = inlined_call_operand.vmem [shape: f32[16,64], index: 0, kind: input, shape index: {}]   ;;  %s595_s1 = inlined_call_operand.vmem [shape: f32[16,4], index: 1, kind: input, shape index: {}]   ;;  %s596_s2 = inlined_call_operand.vmem [shape: f32[64,128], index: 2, kind: input, shape index: {}]   ;;  %s597_s3 = inlined_call_operand.vmem [shape: f32[4,128], index: 3, kind: input, shape index: {}]   ;;  %s598_s4 = inlined_call_operand.vmem [shape: f32[16,128], index: 4, kind: output, shape index: {}]  }
   0x1 LB: > { %s439_s16 = sadd.s32 4294967295, %s517_s15   ;;  %p443_p0 = scmp.ge.s32.totalorder %s517_s15, 1  ;;  %s517_s15 = sphi %s547_s15, %s14_s15  }
   0x2   : > { %p170_p1 = scmp.lt.s32.totalorder %s517_s15, 3 }
   0x4   : > { %p171_p2 = pnand %p443_p0, %p170_p1 }
   0x5   : > { %v211_v0 = vld [vmem:[%s596_s2] sm:$0xff] (!%p171_p2)  ;;  %v212_v1 = vld [vmem:[%s596_s2 + $0x8] sm:$0xff] (!%p171_p2)  ;;  %v213_v2 = vld [vmem:[%s596_s2 + $0x10] sm:$0xff] (!%p171_p2)  ;;  %vm225_vm0 = vcmask (!%p171_p2), 1043456   ;;  %v519_v3 = vmov (!%p171_p2), 0.0|0.0   ;;  %v520_v6 = vmov (!%p171_p2), 0.0  }
   0x6   : > { %174 = sbr.rel (%p171_p2) target bundleno = 238 (0xee), region = 36  ;;  %487 = vmatprep.subr.bf16.mxu0 (!%p171_p2), %v519_v3  ;;  %v488_v4 = vpack.c.bf16 (!%p171_p2), %v212_v1, %v211_v0  ;;  %v214_v5 = vld [vmem:[%s596_s2 + $0x18] sm:$0xff] (!%p171_p2)  ;;  %463 = vmatprep.subr.mxu1 (!%p171_p2), %v520_v6  ;;  %p198_p3 = scmp.lt.s32.totalorder (!%p171_p2), %s439_s16, 1  ;;  %v220_v7 = vld [vmem:[%s597_s3] sm:$0xf] (!%p171_p2)  ;;  %vm521_vm1 = vmmov (!%p171_p2), 0  }
   0x7   : > { %465 = vmatprep.mubr.msk.f32.mxu1 (!%p171_p2), %vm521_vm1, %v520_v6  ;;  %484 = vmatprep.mubr.msk.f32.mxu0 (!%p171_p2), %vm521_vm1, %v520_v6  ;;  %v491_v8 = vpack.c.bf16 (!%p171_p2), %v214_v5, %v213_v2  ;;  %v215_v9 = vld [vmem:[%s596_s2 + $0x20] sm:$0xff] (!%p171_p2)  ;;  %v216_v10 = vld [vmem:[%s596_s2 + $0x28] sm:$0xff] (!%p171_p2)  ;;  %vm221_vm2 = vcmask (!%p171_p2), 31744   ;;  %v217_v13 = vld [vmem:[%s596_s2 + $0x30] sm:$0xff] (!%p171_p2)  ;;  %vm299_vm3 = vcmask (!%p171_p2), 523264  }
   0x8   : > { %489 = vmatpush3.bf16.msra.mxu0 (!%p171_p2), %v488_v4  ;;  %464 = vmatpush3.msk.msra.mxu1 (!%p171_p2), %vm225_vm0, %v220_v7  ;;  %v494_v11 = vpack.c.bf16 (!%p171_p2), %v216_v10, %v215_v9  ;;  %v218_v14 = vld [vmem:[%s596_s2 + $0x38] sm:$0xff] (!%p171_p2) }
   0x9   : > { %490 = vmatprep.subr.bf16.mxu0 (!%p171_p2), %v519_v3  ;;  %v497_v15 = vpack.c.bf16 (!%p171_p2), %v218_v14, %v217_v13 }
   0xc   : > { %492 = vmatpush3.bf16.msra.mxu0 (!%p171_p2), %v491_v8 }
   0xd   : > { %s600_s16 = smov (!%p198_p3, %s439_s16), 1  ;;  %493 = vmatprep.subr.bf16.mxu0 %v519_v3 }
   0xe   : > { %s444_s5 = sshll.u32 %s600_s16, 3 }
   0xf   : > { %s205_s8 = scalar_lea.vmem %s595_s1, %s444_s5  ;;  %s201_s16 = scalar_lea.vmem %s594_s0, %s444_s5 }
  0x10   : > { %v219_v12 = vld [vmem:[%s205_s8] sm:$0xff]  ;;  %495 = vmatpush3.bf16.msra.mxu0 %v494_v11  ;;  %s209_s19 = scalar_lea.vmem %s598_s4, %s444_s5 }
  0x11   : > { %466 = vmatmul.mubr.msk.f32.vlgmr.msra.gmra.mrb[0].mxu1 %vm221_vm2, %v219_v12  ;;  %496 = vmatprep.subr.bf16.mxu0 %v519_v3  ;;  %v210_v16 = vld [vmem:[%s201_s16] sm:$0xff] }
  0x14   : > { %498 = vmatpush3.bf16.msra.mxu0 %v497_v15 }
  0x17   : > { %485 = vmatmul.mubr.msk.f32.vlgmr.msra.gmra.mrb[0].mxu0 %vm299_vm3, %v210_v16 }
  0xe4   : > { %v295_v17 = vpop.f32.mrb[0].mxu1 }
  0xe5   : > { %v467_v18 = vpop.f32.mrb[1].mxu1 }
  0xea   : > { %v369_v19 = vpop.f32.mrb[0].mxu0 }
  0xeb   : > { %v370_v20 = vadd.f32 %v369_v19, %v295_v17  ;;  %v486_v21 = vpop.f32.mrb[1].mxu0 }
  0xed   : > { %373 = vst [vmem:[%s209_s19] sm:$0xff] %v370_v20 }
  0xee PF: > { %s14_s15 = sadd.s32 1, %s517_s15  }
  0xef   : > { %p11_p4 = scmp.ge.s32.totalorder %s14_s15, 4  }
  0xf1   :  { %13 = sbr.rel (!%p11_p4) target bundleno = 1 (0x1), region = 69 }

</bundles_post_ra>
